<compile_context>
chip_gen: v6e
topology: v6e:2x2x1
jax: 0.10.0
libtpu: 0.0.40
codegen_flags: <defaults>
</compile_context>

<pallas_src>
import jax
import jax.numpy as jnp
import numpy as np
from jax.experimental import pallas as pl
from jax.experimental.pallas import tpu as pltpu

LANES = 128
SUBLANES = 8
MAX_TILE_ROWS = 1024
INPUT_BUDGET_BYTES = 8 * 2**20  # per pipeline buffer (x2 for double buffering)


def _cdiv(a, b):
    return -(-a // b)


def _round_down(x, m):
    return (x // m) * m


def _pick_tiling(B, C, R, logit_bytes, tgt_bytes):
    """Choose (Bt, r_tile, num_chunks) from a per-step VMEM budget."""
    bytes_per_row = LANES * (C * logit_bytes + tgt_bytes)      # per batch element
    rows_budget = max(int(INPUT_BUDGET_BYTES // bytes_per_row), SUBLANES)
    rows_budget = min(rows_budget, MAX_TILE_ROWS)
    if R < SUBLANES:
        r_tile = R                      # full extent (sub-8 only when == array dim)
    else:
        r_tile = min(R, rows_budget)
        align = 32 if (R >= 32 and rows_budget >= 32) else SUBLANES
        r_tile = max(_round_down(r_tile, align), SUBLANES)
    num_chunks = _cdiv(R, r_tile)
    # Fold small images' batch elements into one grid step (avoid tiny blocks).
    bt = 1
    if num_chunks == 1 and B > 1:
        for cand in range(2, B + 1):
            if B % cand == 0 and cand * R * bytes_per_row <= INPUT_BUDGET_BYTES:
                bt = cand
    return bt, r_tile, num_chunks


def _make_focal_kernel(*, C, Bt, r_tile, num_chunks, n_true, gamma, alpha_vals,
                       needs_mask):
    gamma = int(gamma)

    def kernel(logits_ref, target_ref, out_ref):
        # logits_ref: (Bt, C, r_tile, 128)   target_ref: (Bt, r_tile, 128)
        # out_ref   : (Bt, 8, 128) f32 -- resident accumulator across chunks.
        k = pl.program_id(1)

        @pl.when(k == 0)
        def _init():
            out_ref[...] = jnp.zeros_like(out_ref)

        t = target_ref[...].astype(jnp.int32)                  # (Bt, r_tile, 128)

        # Pass 1: per-pixel running max over classes, in the input dtype
        # (max is exact in bf16); re-reads logits_ref -- no C live slabs.
        m = logits_ref[:, 0, :, :]
        for c in range(1, C):
            m = jnp.maximum(m, logits_ref[:, c, :, :])
        m = m.astype(jnp.float32)

        # Pass 2 (fused): sum-of-exp + target-class gather (+ alpha gather).
        # TODO(synk): for C >~ 32 switch this unrolled loop to a lax.fori_loop
        # over class tiles (or put classes on the lane axis).
        x0 = logits_ref[:, 0, :, :].astype(jnp.float32)
        se = jnp.exp(x0 - m)
        sel = x0
        at = None
        if alpha_vals is not None:
            at = jnp.full_like(x0, alpha_vals[0])
        for c in range(1, C):
            xc = logits_ref[:, c, :, :].astype(jnp.float32)
            se = se + jnp.exp(xc - m)
            is_c = t == c
            sel = jnp.where(is_c, xc, sel)
            if alpha_vals is not None:
                at = jnp.where(is_c, alpha_vals[c], at)

        lse = m + jnp.log(se)
        log_pt = sel - lse                                     # <= 0
        log_pt_w = log_pt * at if alpha_vals is not None else log_pt

        if gamma == 0:
            loss = -log_pt_w                    # (1 - pt)^0 == 1: skip the exp
        else:
            pt = jnp.exp(log_pt)                # un-weighted log_pt, as in torch
            omp = 1.0 - pt
            w = omp
            for _ in range(gamma - 1):          # integer gamma: repeated mul
                w = w * omp
            loss = -(w * log_pt_w)

        def accumulate(val):                    # val: (Bt, r_tile, 128) f32
            if r_tile % SUBLANES == 0:
                part = val[:, 0:SUBLANES, :]
                for i in range(1, r_tile // SUBLANES):
                    part = part + val[:, i * SUBLANES:(i + 1) * SUBLANES, :]
                out_ref[...] += part            # pure VALU adds, dense store
            else:                               # r_tile < 8 (tiny single chunk)
                out_ref[:, 0:r_tile, :] += val

        if needs_mask:
            # Only the last chunk can contain padded / ragged-overhang pixels.
            @pl.when(k == num_chunks - 1)
            def _acc_masked():
                base = (num_chunks - 1) * r_tile * LANES
                row = jax.lax.broadcasted_iota(jnp.int32, (r_tile, LANES), 0)
                lane = jax.lax.broadcasted_iota(jnp.int32, (r_tile, LANES), 1)
                gpix = base + row * LANES + lane
                accumulate(jnp.where((gpix < n_true)[None, :, :], loss, 0.0))

            if num_chunks > 1:
                @pl.when(k != num_chunks - 1)
                def _acc_plain():
                    accumulate(loss)
        else:
            accumulate(loss)

    return kernel


def focal_loss(logits, target, gamma=0, alpha=None, reduction="none"):
    """logits: (B, C, H, W) float (any float dtype); target: (B, H, W) int in [0, C)."""
    B, C = int(logits.shape[0]), int(logits.shape[1])
    N = int(np.prod(logits.shape[2:]))
    assert int(target.shape[0]) == B and int(np.prod(target.shape[1:])) == N
    assert C > 1

    # alpha is a compile-time constant, mirroring the torch module.
    if isinstance(alpha, (float, int)) and not isinstance(alpha, bool):
        assert C == 2, "scalar alpha implies num_class == 2"
        alpha_vals = (float(alpha), 1.0 - float(alpha))
    elif isinstance(alpha, (list, tuple)):
        assert len(alpha) == C
        alpha_vals = tuple(float(a) for a in alpha)
    else:
        alpha_vals = None

    assert float(gamma) == int(gamma) and gamma >= 0, "gamma must be a non-negative int"
    gamma = int(gamma)
    # TODO(synk): non-integer gamma would need a guarded jnp.power path.

    # Lane-dense pixel layout: N -> (R, 128).  Pad only to the next multiple
    # of 128 (needed for the reshape); ragged last chunks are masked in-kernel
    # instead of materializing a full jnp.pad copy of the logits.
    R = _cdiv(N, LANES)
    N128 = R * LANES

    # int8 targets cut HBM traffic for large images; keep int32 for tiny ones.
    tgt_dtype = jnp.int8 if (C <= 127 and R >= 32) else jnp.int32
    mp = logits.reshape(B, C, N)                       # keep input dtype (bf16 ok)
    mt = target.reshape(B, N).astype(tgt_dtype)
    if N128 != N:
        mp = jnp.pad(mp, ((0, 0), (0, 0), (0, N128 - N)))
        mt = jnp.pad(mt, ((0, 0), (0, N128 - N)))
    mp = mp.reshape(B, C, R, LANES)
    mt = mt.reshape(B, R, LANES)

    logit_bytes = int(np.dtype(mp.dtype).itemsize)
    tgt_bytes = int(np.dtype(mt.dtype).itemsize)
    Bt, r_tile, num_chunks = _pick_tiling(B, C, R, logit_bytes, tgt_bytes)
    needs_mask = (num_chunks * r_tile * LANES != N)

    kernel = _make_focal_kernel(
        C=C, Bt=Bt, r_tile=r_tile, num_chunks=num_chunks, n_true=N,
        gamma=gamma, alpha_vals=alpha_vals, needs_mask=needs_mask)

    # Per-step VMEM: double-buffered inputs + f32 temporaries + output block.
    block_in_bytes = Bt * r_tile * LANES * (C * logit_bytes + tgt_bytes)
    est = (2 * block_in_bytes
           + 8 * Bt * r_tile * LANES * 4
           + 2 * Bt * SUBLANES * LANES * 4)
    vmem_limit = int(min(48 * 2**20, max(32 * 2**20, 2 * est)))

    # TODO(synk): on v7x with B == 1 the 'parallel' axis has a single unit of
    # work; sharding the chunk axis across both TensorCores (per-shard partial
    # sums reduced in the wrapper) would use the second core.
    partial = pl.pallas_call(
        kernel,
        out_shape=jax.ShapeDtypeStruct((B // Bt, Bt, SUBLANES, LANES), jnp.float32),
        grid_spec=pltpu.PrefetchScalarGridSpec(
            num_scalar_prefetch=0,
            grid=(B // Bt, num_chunks),
            in_specs=[
                pl.BlockSpec((Bt, C, r_tile, LANES), lambda b, k: (b, 0, k, 0)),
                pl.BlockSpec((Bt, r_tile, LANES), lambda b, k: (b, k, 0)),
            ],
            out_specs=pl.BlockSpec((None, Bt, SUBLANES, LANES),
                                   lambda b, k: (b, 0, 0, 0)),
        ),
        compiler_params=pltpu.CompilerParams(
            dimension_semantics=("parallel", "arbitrary"),
            vmem_limit_bytes=vmem_limit),
    )(mp, mt)

    # Final tiny reduction + mean normalization in the wrapper (one XLA op).
    per_batch = partial.reshape(B, SUBLANES * LANES).sum(axis=-1) * (1.0 / float(N))

    if reduction == "none":
        return per_batch                       # (B,) per-batch pixel mean
    if reduction == "sum":
        return jnp.sum(per_batch) * float(N)   # total sum over all elements
    if reduction == "mean":
        return jnp.mean(per_batch)             # global mean (equal N per batch)
    raise ValueError(f"unknown reduction {reduction!r}")


def focal_loss_ref(logits, target, gamma=0, alpha=None, reduction="none"):
    """Plain-JAX reference mirroring the PyTorch FocalLoss forward."""
    B, C = logits.shape[0], logits.shape[1]
    x = logits.astype(jnp.float32).reshape(B, C, -1)
    x = jnp.transpose(x, (0, 2, 1)).reshape(-1, C)             # (B*N, C)
    t = target.reshape(-1).astype(jnp.int32)
    logp = jax.nn.log_softmax(x, axis=-1)
    log_pt = jnp.take_along_axis(logp, t[:, None], axis=1)[:, 0]
    pt = jnp.exp(log_pt)
    if alpha is not None:
        if isinstance(alpha, (float, int)) and not isinstance(alpha, bool):
            a = jnp.array([alpha, 1.0 - alpha], jnp.float32)
        else:
            a = jnp.array(alpha, jnp.float32)
        log_pt = log_pt * a[t]
    loss = -((1.0 - pt) ** gamma) * log_pt
    if reduction == "none":
        return loss.reshape(B, -1).mean(axis=1)
    if reduction == "sum":
        return loss.sum()
    return loss.mean()


if __name__ == "__main__":
    B, C, H, W = 2, 4, 16, 16
    key = jax.random.PRNGKey(0)
    k1, k2 = jax.random.split(key)
    logits = jax.random.normal(k1, (B, C, H, W), dtype=jnp.float32)
    target = jax.random.randint(k2, (B, H, W), 0, C, dtype=jnp.int32)

    # Module defaults: gamma=0, alpha=None, reduction='none'.
    out0 = jax.block_until_ready(focal_loss(logits, target))
    ref0 = focal_loss_ref(logits, target)
    assert out0.shape == (B,)
    np.testing.assert_allclose(np.asarray(out0), np.asarray(ref0), rtol=1e-4, atol=1e-5)

    # Non-trivial gamma + per-class alpha weights.
    alpha = [0.25, 0.75, 0.5, 0.5]
    out2 = jax.block_until_ready(focal_loss(logits, target, gamma=2, alpha=alpha))
    ref2 = focal_loss_ref(logits, target, gamma=2, alpha=alpha)
    np.testing.assert_allclose(np.asarray(out2), np.asarray(ref2), rtol=1e-4, atol=1e-5)

    # Ragged / multi-chunk path: N not a multiple of 128 and R not a multiple
    # of the row tile (exercises the last-chunk mask and chunk accumulation).
    H2, W2 = 48, 48
    k3, k4 = jax.random.split(k2)
    logits2 = jax.random.normal(k3, (B, C, H2, W2), dtype=jnp.float32)
    target2 = jax.random.randint(k4, (B, H2, W2), 0, C, dtype=jnp.int32)
    out3 = jax.block_until_ready(focal_loss(logits2, target2, gamma=2, alpha=alpha))
    ref3 = focal_loss_ref(logits2, target2, gamma=2, alpha=alpha)
    np.testing.assert_allclose(np.asarray(out3), np.asarray(ref3), rtol=1e-4, atol=1e-5)

    print("KERNEL_OK")
</pallas_src>

<mosaic_0001>
module attributes {stable_mosaic.version = 11 : i64} {
  func.func @kernel(%arg0: i32, %arg1: i32, %arg2: memref<2x4x2x128xf32, #tpu.memory_space<vmem>>, %arg3: memref<2x2x128xi32, #tpu.memory_space<vmem>>, %arg4: memref<1x2x8x128xf32, #tpu.memory_space<vmem>>) attributes {dimension_semantics = [#tpu.dimension_semantics<parallel>, #tpu.dimension_semantics<arbitrary>], iteration_bounds = array<i64: 1, 1>, scalar_prefetch = 0 : i64, scratch_operands = 0 : i64, tpu.core_type = #tpu.core_type<tc>, window_params = [{transform_indices = @transform_0, window_bounds = array<i64: 2, 4, 2, 128>}, {transform_indices = @transform_1, window_bounds = array<i64: 2, 2, 128>}, {transform_indices = @transform_2, window_bounds = array<i64: 1, 2, 8, 128>}]} {
    %c0_i32 = arith.constant 0 : i32
    %0 = arith.cmpi eq, %arg1, %c0_i32 : i32
    %1 = arith.extui %0 : i1 to i32
    %c0_i32_0 = arith.constant 0 : i32
    %2 = arith.cmpi ne, %1, %c0_i32_0 : i32
    scf.if %2 {
      %cst_40 = arith.constant 0.000000e+00 : f32
      %54 = vector.broadcast %cst_40 : f32 to vector<2x8x128xf32>
      %c0_41 = arith.constant 0 : index
      %c0_42 = arith.constant 0 : index
      %c0_43 = arith.constant 0 : index
      %c0_44 = arith.constant 0 : index
      %55 = vector.load %arg4[%c0_41, %c0_42, %c0_43, %c0_44] : memref<1x2x8x128xf32, #tpu.memory_space<vmem>>, vector<1x2x8x128xf32>
      %56 = vector.shape_cast %55 : vector<1x2x8x128xf32> to vector<2x8x128xf32>
      %57 = vector.shape_cast %54 : vector<2x8x128xf32> to vector<1x2x8x128xf32>
      tpu.vector_store %arg4[%c0_41, %c0_42, %c0_43, %c0_44], %57 {strides = array<i32>} : memref<1x2x8x128xf32, #tpu.memory_space<vmem>>, vector<1x2x8x128xf32>,
    } else {
    }
    %c0 = arith.constant 0 : index
    %c0_1 = arith.constant 0 : index
    %c0_2 = arith.constant 0 : index
    %3 = vector.load %arg3[%c0, %c0_1, %c0_2] : memref<2x2x128xi32, #tpu.memory_space<vmem>>, vector<2x2x128xi32>
    %c0_3 = arith.constant 0 : index
    %c0_4 = arith.constant 0 : index
    %c0_5 = arith.constant 0 : index
    %c0_6 = arith.constant 0 : index
    %4 = vector.load %arg2[%c0_3, %c0_4, %c0_5, %c0_6] : memref<2x4x2x128xf32, #tpu.memory_space<vmem>>, vector<2x1x2x128xf32>
    %5 = vector.shape_cast %4 : vector<2x1x2x128xf32> to vector<2x2x128xf32>
    %c0_7 = arith.constant 0 : index
    %c1 = arith.constant 1 : index
    %c0_8 = arith.constant 0 : index
    %c0_9 = arith.constant 0 : index
    %6 = vector.load %arg2[%c0_7, %c1, %c0_8, %c0_9] : memref<2x4x2x128xf32, #tpu.memory_space<vmem>>, vector<2x1x2x128xf32>
    %7 = vector.shape_cast %6 : vector<2x1x2x128xf32> to vector<2x2x128xf32>
    %8 = arith.maximumf %5, %7 : vector<2x2x128xf32>
    %c0_10 = arith.constant 0 : index
    %c2 = arith.constant 2 : index
    %c0_11 = arith.constant 0 : index
    %c0_12 = arith.constant 0 : index
    %9 = vector.load %arg2[%c0_10, %c2, %c0_11, %c0_12] : memref<2x4x2x128xf32, #tpu.memory_space<vmem>>, vector<2x1x2x128xf32>
    %10 = vector.shape_cast %9 : vector<2x1x2x128xf32> to vector<2x2x128xf32>
    %11 = arith.maximumf %8, %10 : vector<2x2x128xf32>
    %c0_13 = arith.constant 0 : index
    %c3 = arith.constant 3 : index
    %c0_14 = arith.constant 0 : index
    %c0_15 = arith.constant 0 : index
    %12 = vector.load %arg2[%c0_13, %c3, %c0_14, %c0_15] : memref<2x4x2x128xf32, #tpu.memory_space<vmem>>, vector<2x1x2x128xf32>
    %13 = vector.shape_cast %12 : vector<2x1x2x128xf32> to vector<2x2x128xf32>
    %14 = arith.maximumf %11, %13 : vector<2x2x128xf32>
    %c0_16 = arith.constant 0 : index
    %c0_17 = arith.constant 0 : index
    %c0_18 = arith.constant 0 : index
    %c0_19 = arith.constant 0 : index
    %15 = vector.load %arg2[%c0_16, %c0_17, %c0_18, %c0_19] : memref<2x4x2x128xf32, #tpu.memory_space<vmem>>, vector<2x1x2x128xf32>
    %16 = vector.shape_cast %15 : vector<2x1x2x128xf32> to vector<2x2x128xf32>
    %17 = arith.subf %16, %14 : vector<2x2x128xf32>
    %18 = math.exp %17 : vector<2x2x128xf32>
    %c0_20 = arith.constant 0 : index
    %c1_21 = arith.constant 1 : index
    %c0_22 = arith.constant 0 : index
    %c0_23 = arith.constant 0 : index
    %19 = vector.load %arg2[%c0_20, %c1_21, %c0_22, %c0_23] : memref<2x4x2x128xf32, #tpu.memory_space<vmem>>, vector<2x1x2x128xf32>
    %20 = vector.shape_cast %19 : vector<2x1x2x128xf32> to vector<2x2x128xf32>
    %21 = arith.subf %20, %14 : vector<2x2x128xf32>
    %22 = math.exp %21 : vector<2x2x128xf32>
    %23 = arith.addf %18, %22 : vector<2x2x128xf32>
    %c1_i32 = arith.constant 1 : i32
    %24 = vector.broadcast %c1_i32 : i32 to vector<2x2x128xi32>
    %25 = arith.cmpi eq, %3, %24 : vector<2x2x128xi32>
    %26 = arith.select %25, %20, %16 : vector<2x2x128xi1>, vector<2x2x128xf32>
    %c0_24 = arith.constant 0 : index
    %c2_25 = arith.constant 2 : index
    %c0_26 = arith.constant 0 : index
    %c0_27 = arith.constant 0 : index
    %27 = vector.load %arg2[%c0_24, %c2_25, %c0_26, %c0_27] : memref<2x4x2x128xf32, #tpu.memory_space<vmem>>, vector<2x1x2x128xf32>
    %28 = vector.shape_cast %27 : vector<2x1x2x128xf32> to vector<2x2x128xf32>
    %29 = arith.subf %28, %14 : vector<2x2x128xf32>
    %30 = math.exp %29 : vector<2x2x128xf32>
    %31 = arith.addf %23, %30 : vector<2x2x128xf32>
    %c2_i32 = arith.constant 2 : i32
    %32 = vector.broadcast %c2_i32 : i32 to vector<2x2x128xi32>
    %33 = arith.cmpi eq, %3, %32 : vector<2x2x128xi32>
    %34 = arith.select %33, %28, %26 : vector<2x2x128xi1>, vector<2x2x128xf32>
    %c0_28 = arith.constant 0 : index
    %c3_29 = arith.constant 3 : index
    %c0_30 = arith.constant 0 : index
    %c0_31 = arith.constant 0 : index
    %35 = vector.load %arg2[%c0_28, %c3_29, %c0_30, %c0_31] : memref<2x4x2x128xf32, #tpu.memory_space<vmem>>, vector<2x1x2x128xf32>
    %36 = vector.shape_cast %35 : vector<2x1x2x128xf32> to vector<2x2x128xf32>
    %37 = arith.subf %36, %14 : vector<2x2x128xf32>
    %38 = math.exp %37 : vector<2x2x128xf32>
    %39 = arith.addf %31, %38 : vector<2x2x128xf32>
    %c3_i32 = arith.constant 3 : i32
    %40 = vector.broadcast %c3_i32 : i32 to vector<2x2x128xi32>
    %41 = arith.cmpi eq, %3, %40 : vector<2x2x128xi32>
    %42 = arith.select %41, %36, %34 : vector<2x2x128xi1>, vector<2x2x128xf32>
    %43 = math.log %39 : vector<2x2x128xf32>
    %44 = arith.addf %14, %43 : vector<2x2x128xf32>
    %45 = arith.subf %42, %44 : vector<2x2x128xf32>
    %cst = arith.constant 0.000000e+00 : f32
    %46 = vector.broadcast %cst : f32 to vector<2x2x128xf32>
    %47 = arith.subf %46, %45 : vector<2x2x128xf32>
    %c0_32 = arith.constant 0 : index
    %c0_33 = arith.constant 0 : index
    %c0_34 = arith.constant 0 : index
    %c0_35 = arith.constant 0 : index
    %48 = vector.load %arg4[%c0_32, %c0_33, %c0_34, %c0_35] : memref<1x2x8x128xf32, #tpu.memory_space<vmem>>, vector<1x2x2x128xf32>
    %49 = vector.shape_cast %48 : vector<1x2x2x128xf32> to vector<2x2x128xf32>
    %50 = arith.addf %49, %47 : vector<2x2x128xf32>
    %c0_36 = arith.constant 0 : index
    %c0_37 = arith.constant 0 : index
    %c0_38 = arith.constant 0 : index
    %c0_39 = arith.constant 0 : index
    %51 = vector.load %arg4[%c0_36, %c0_37, %c0_38, %c0_39] : memref<1x2x8x128xf32, #tpu.memory_space<vmem>>, vector<1x2x2x128xf32>
    %52 = vector.shape_cast %51 : vector<1x2x2x128xf32> to vector<2x2x128xf32>
    %53 = vector.shape_cast %50 : vector<2x2x128xf32> to vector<1x2x2x128xf32>
    tpu.vector_store %arg4[%c0_36, %c0_37, %c0_38, %c0_39], %53 {strides = array<i32>} : memref<1x2x8x128xf32, #tpu.memory_space<vmem>>, vector<1x2x2x128xf32>,
    return
  }
  func.func @transform_0(%arg0: i32, %arg1: i32) -> (i32, i32, i32, i32) {
    %c0_i32 = arith.constant 0 : i32
    %c0_i32_0 = arith.constant 0 : i32
    %c0_i32_1 = arith.constant 0 : i32
    return %arg0, %c0_i32, %arg1, %c0_i32_0 : i32, i32, i32, i32
  }
  func.func @transform_1(%arg0: i32, %arg1: i32) -> (i32, i32, i32) {
    %c0_i32 = arith.constant 0 : i32
    %c0_i32_0 = arith.constant 0 : i32
    return %arg0, %arg1, %c0_i32 : i32, i32, i32
  }
  func.func @transform_2(%arg0: i32, %arg1: i32) -> (i32, i32, i32, i32) {
    %c0_i32 = arith.constant 0 : i32
    %c0_i32_0 = arith.constant 0 : i32
    %c0_i32_1 = arith.constant 0 : i32
    %c0_i32_2 = arith.constant 0 : i32
    return %arg0, %c0_i32, %c0_i32_0, %c0_i32_1 : i32, i32, i32, i32
  }
}

</mosaic_0001>

<bundles_post_ra>
// kernel: tpu_custom_call.1
= control target key start
LH: loop header
LB: loop body
LE: loop exit
PB: predicated region body
PF: predicated region fallthrough
CT: control target
= control target key end

     0   :  { %7 = vsyncpa [#allocation3], 0  ;;  %s277_s0 = inlined_call_operand.hbm [shape: f32[2,4,2,128], index: 0, kind: input, shape index: {}]   ;;  %s278_s1 = inlined_call_operand.hbm [shape: s32[2,2,128], index: 1, kind: input, shape index: {}]   ;;  %s279_s2 = inlined_call_operand.hbm [shape: f32[1,2,8,128], index: 2, kind: output, shape index: {}]  }
   0x1   :  { %8 = vsyncpa [#allocation6], 0 }
   0x2   :  { %9 = vsyncpa [#allocation4], 0  ;;  %s235_s9 = smov [#allocation2]  }
   0x3   :  { %s15_s10 = sshll.u32 %s235_s9, 4  ;;  %s16_s10 = int_to_ptr.vmem [resolvable:$true] %s15_s10 }
   0x4   :  { %s177_s11 = scalar_lea.vmem %s16_s10, 256  ;;  %p182_p1 = scmp.lt.s32.totalorder %s16_s10, %s16_s10 }
   0x5   :  { %p178_p0 = scmp.ne.s32.totalorder %s16_s10, %s177_s11  ;;  %p183_p2 = scmp.lt.s32.totalorder %s177_s11, %s177_s11 }
   0x7   :  { %p184_p3 = por %p183_p2, %p182_p1 }
   0x9   :  { %p185_p4 = pnand %p184_p3, %p178_p0 }
   0xb   :  { %188 = shalt.err (!%p185_p4)
}
   0xc   :  { %s236_s12 = smov 32   ;;  %s237_s13 = smov 2  }
   0xd   :  { %21 = dma.hbm_to_vmem [thread:$0]  %s277_s0, 256, %s16_s10, [#allocation3], %s236_s12, %s236_s12, %s237_s13  }
   0xe   :  { %s238_s16 = smov [#allocation5]  }
   0xf   :  { %s27_s17 = sshll.u32 %s238_s16, 4  ;;  %s28_s17 = int_to_ptr.vmem [resolvable:$true] %s27_s17 }
  0x10   :  { %s197_s18 = scalar_lea.vmem %s28_s17, 64  ;;  %p202_p6 = scmp.lt.s32.totalorder %s28_s17, %s28_s17 }
  0x11   :  { %p198_p5 = scmp.ne.s32.totalorder %s28_s17, %s197_s18  ;;  %p203_p7 = scmp.lt.s32.totalorder %s197_s18, %s197_s18 }
  0x13   :  { %p204_p8 = por %p203_p7, %p202_p6 }
  0x15   :  { %p205_p9 = pnand %p204_p8, %p198_p5 }
  0x17   :  { %208 = shalt.err (!%p205_p9)
}
  0x18   :  { %33 = dma.hbm_to_vmem [thread:$0]  %s278_s1, 64, %s28_s17, [#allocation6], %s236_s12, %s236_s12, %s237_s13  }
  0x19   :  { %229 = dma.done.wait [#allocation3], 256  }
  0x1a   :  { %230 = vsyncadd [#allocation3], 4294967040 }
  0x1b   :  { %231 = dma.done.wait [#allocation6], 64  }
  0x1c   :  { %232 = vsyncadd [#allocation6], 4294967232  ;;  %v239_v0 = vmov 0.0   ;;  %v48_v1 = vld [vmem:[#allocation2] sm:$0x3]  ;;  %s240_s0 = smov [#allocation7]  }
  0x1d   :  { %44 = vst [vmem:[#allocation7] sm:$0xff] %v239_v0  ;;  %45 = vst [vmem:[#allocation7 + $0x8] sm:$0xff] %v239_v0  ;;  %v51_v2 = vld [vmem:[#allocation2 + $0x2] sm:$0x3]  ;;  %v56_v4 = vld [vmem:[#allocation2 + $0x4] sm:$0x3] }
  0x1e   :  { %v53_v3 = vmax.f32 %v48_v1, %v51_v2  ;;  %v264_v5 = vld [vmem:[#allocation2 + $0x6] sm:$0x3]  ;;  %v49_v7 = vld [vmem:[#allocation2 + $0x8] sm:$0x3]  ;;  %v52_v8 = vld [vmem:[#allocation2 + $0xa] sm:$0x3] }
  0x1f   :  { %v57_v9 = vld [vmem:[#allocation2 + $0xc] sm:$0x3]  ;;  %v54_v10 = vmax.f32 %v49_v7, %v52_v8  ;;  %v267_v12 = vld [vmem:[#allocation2 + $0xe] sm:$0x3]  ;;  %v46_v45 = vld [vmem:[#allocation5] sm:$0x3] }
  0x20   :  { %v58_v6 = vmax.f32 %v53_v3, %v56_v4  ;;  %vm79_vm0 = vcmp.eq.s32.totalorder %v46_v45, 1  ;;  %v47_v46 = vld [vmem:[#allocation5 + $0x2] sm:$0x3]  ;;  %vm91_vm1 = vcmp.eq.s32.totalorder %v46_v45, 2  ;;  %vm103_vm3 = vcmp.eq.s32.totalorder %v46_v45, 3  ;;  %s128_s1 = sshll.u32 %s240_s0, 4  ;;  %s129_s1 = int_to_ptr.vmem [resolvable:$true] %s128_s1 }
  0x21   :  { %v59_v13 = vmax.f32 %v54_v10, %v57_v9  ;;  %v81_v47 = vsel %vm79_vm0, %v51_v2, %v48_v1  ;;  %vm80_vm2 = vcmp.eq.s32.totalorder %v47_v46, 1  ;;  %vm92_vm4 = vcmp.eq.s32.totalorder %v47_v46, 2  ;;  %s209_s21 = scalar_lea.vmem %s129_s1, 256  ;;  %p214_p11 = scmp.lt.s32.totalorder %s129_s1, %s129_s1 }
  0x22   :  { %v63_v11 = vmax.f32 %v58_v6, %v264_v5  ;;  %v93_v48 = vsel %vm91_vm1, %v56_v4, %v81_v47  ;;  %v82_v50 = vsel %vm80_vm2, %v52_v8, %v49_v7  ;;  %vm104_vm5 = vcmp.eq.s32.totalorder %v47_v46, 3  ;;  %p210_p10 = scmp.ne.s32.totalorder %s129_s1, %s209_s21  ;;  %p215_p12 = scmp.lt.s32.totalorder %s209_s21, %s209_s21 }
  0x23   :  { %v64_v18 = vmax.f32 %v59_v13, %v267_v12  ;;  %v105_v52 = vsel %vm103_vm3, %v264_v5, %v93_v48  ;;  %v94_v54 = vsel %vm92_vm4, %v57_v9, %v82_v50 }
  0x24   :  { %v65_v14 = vsub.f32 %v48_v1, %v63_v11  ;;  %v71_v15 = vsub.f32 %v51_v2, %v63_v11  ;;  %v83_v16 = vsub.f32 %v56_v4, %v63_v11  ;;  %v95_v17 = vsub.f32 %v264_v5, %v63_v11  ;;  %v117_v58 = vld [vmem:[#allocation7] sm:$0x3]  ;;  %v118_v0 = vld [vmem:[#allocation7 + $0x8] sm:$0x3]  ;;  %p216_p13 = por %p215_p12, %p214_p11 }
  0x25   :  { %v66_v23 = vsub.f32 %v49_v7, %v64_v18  ;;  %v72_v24 = vsub.f32 %v52_v8, %v64_v18  ;;  %v84_v25 = vsub.f32 %v57_v9, %v64_v18  ;;  %v96_v26 = vsub.f32 %v267_v12, %v64_v18 }
  0x26   :  { %v67_v19 = vmul.f32 1.442695, %v65_v14  ;;  %v73_v20 = vmul.f32 1.442695, %v71_v15  ;;  %v85_v21 = vmul.f32 1.442695, %v83_v16  ;;  %v106_v59 = vsel %vm104_vm5, %v267_v12, %v94_v54  ;;  %p217_p0 = pnand %p216_p13, %p210_p10 }
  0x27   :  { %v97_v22 = vmul.f32 1.442695, %v95_v17  ;;  %v69_v27 = vmul.f32 1.442695, %v66_v23  ;;  %v75_v28 = vmul.f32 1.442695, %v72_v24 }
  0x28   :  { %149 = vpow2.f32 %v67_v19  ;;  %v87_v29 = vmul.f32 1.442695, %v84_v25  ;;  %v99_v30 = vmul.f32 1.442695, %v96_v26 }
  0x29   :  { %151 = vpow2.f32 %v73_v20 }
  0x2a   :  { %153 = vpow2.f32 %v85_v21 }
  0x2b   :  { %155 = vpow2.f32 %v97_v22 }
  0x2c   :  { %157 = vpow2.f32 %v69_v27 }
  0x2d   :  { %159 = vpow2.f32 %v75_v28 }
  0x2e   :  { %161 = vpow2.f32 %v87_v29 }
  0x2f   :  { %163 = vpow2.f32 %v99_v30 }
  0x35   :  { %v150_v31 = vpop.eup %149 }
  0x36   :  { %v152_v32 = vpop.eup %151 }
  0x37   :  { %v154_v33 = vpop.eup %153  ;;  %v77_v34 = vadd.f32 %v152_v32, %v150_v31 }
  0x38   :  { %v156_v35 = vpop.eup %155 }
  0x39   :  { %v158_v36 = vpop.eup %157  ;;  %v89_v37 = vadd.f32 %v154_v33, %v77_v34 }
  0x3a   :  { %v160_v38 = vpop.eup %159 }
  0x3b   :  { %v162_v39 = vpop.eup %161  ;;  %v101_v40 = vadd.f32 %v156_v35, %v89_v37  ;;  %v78_v41 = vadd.f32 %v160_v38, %v158_v36 }
  0x3c   :  { %v164_v42 = vpop.eup %163 }
  0x3d   :  { %165 = vlog2.f32 %v101_v40  ;;  %v90_v43 = vadd.f32 %v162_v39, %v78_v41 }
  0x3f   :  { %v102_v44 = vadd.f32 %v164_v42, %v90_v43 }
  0x41   :  { %167 = vlog2.f32 %v102_v44 }
  0x4a   :  { %v166_v49 = vpop.eup %165 }
  0x4b   :  { %v108_v51 = vmul.f32 0.6931472, %v166_v49 }
  0x4d   :  { %v111_v53 = vadd.f32 %v108_v51, %v63_v11 }
  0x4e   :  { %v168_v55 = vpop.eup %167 }
  0x4f   :  { %v113_v56 = vsub.f32 %v105_v52, %v111_v53  ;;  %v110_v57 = vmul.f32 0.6931472, %v168_v55 }
  0x51   :  { %v115_v60 = vsub.f32 0.0, %v113_v56  ;;  %v112_v61 = vadd.f32 %v110_v57, %v64_v18 }
  0x53   :  { %v119_v62 = vadd.f32 %v117_v58, %v115_v60  ;;  %v114_v63 = vsub.f32 %v106_v59, %v112_v61 }
  0x55   :  { %121 = vst [vmem:[#allocation7] sm:$0x3] %v119_v62  ;;  %v116_v1 = vsub.f32 0.0, %v114_v63 }
  0x57   :  { %v120_v2 = vadd.f32 %v118_v0, %v116_v1 }
  0x59   :  { %122 = vst [vmem:[#allocation7 + $0x8] sm:$0x3] %v120_v2 }
  0x5a   :  { %220 = shalt.err (!%p217_p0)
}
  0x5b   :  { %s241_s22 = smov 128   ;;  %s242_s23 = smov 8  }
  0x5c   :  { %134 = dma.vmem_to_hbm [thread:$0]  %s129_s1, 256, %s279_s2, [#allocation4], %s241_s22, %s241_s22, %s242_s23  }
  0x5d   :  { %233 = dma.done.wait [#allocation4], 256  }
  0x5e   :  { %234 = vsyncadd [#allocation4], 4294967040 }
  0x5f   :  { %138 = vsyncpa [#allocation3], 1 }
  0x60   :  { %139 = vsyncpa [#allocation6], 1 }
  0x61   :  { %140 = vsyncpa [#allocation4], 1 }

</bundles_post_ra>
